<compile_context>
chip_gen: v5e
topology: v5e:2x2
jax: 0.10.0
libtpu: 0.0.40
codegen_flags: <defaults>
</compile_context>

<pallas_src>
import jax
import jax.numpy as jnp
from jax.experimental import pallas as pl
from jax.experimental.pallas import tpu as pltpu

_BN_EPS = 1e-5
_LEAKY_SLOPE = 0.2


def mlp_lora_kernel(x_ref, b_ref, params_ref, o_ref):
    # x: (TB, D); b: (1, D); params: (2, out_p) with row 0 = a_eff, row 1 = b_eff
    x = x_ref[...].astype(jnp.float32)
    bvec = b_ref[...].astype(jnp.float32)

    # Rank-1 projection: s = x @ B.T as an f32 lane reduction (XLU slot).
    s = jnp.sum(x * bvec, axis=-1, keepdims=True)             # (TB, 1)

    a_eff = params_ref[0:1, :]                                 # (1, out_p)
    b_eff = params_ref[1:2, :]                                 # (1, out_p)

    # Folded (linear bias + BatchNorm eval) affine as a VPU broadcast outer
    # product: y = s * a_eff + b_eff.
    y = s * a_eff + b_eff                                      # (TB, out_p)

    # LeakyReLU(0.2) as a single VALU max (slope in (0,1) => max is exact).
    # Dropout is identity at inference.
    y = jnp.maximum(y, _LEAKY_SLOPE * y)
    o_ref[...] = y.astype(o_ref.dtype)


def _round_up(v, m):
    return ((v + m - 1) // m) * m


def _pick_batch_tile(batch, d_in, d_out_p, in_bytes, out_bytes,
                     budget=12 * 1024 * 1024):
    # Double-buffered x tile + double-buffered output tile must fit well under
    # the scoped VMEM limit on every generation (v7x: 64 MiB physical VMEM).
    per_row = 2 * (in_bytes * d_in + out_bytes * d_out_p)
    tb = budget // max(per_row, 1)
    tb = max(8, min(1024, (tb // 8) * 8))
    return int(min(tb, _round_up(batch, 8)))


def mlp_lora_forward(x, A, B, bias, gamma, beta, running_mean, running_var):
    batch, input_dim = x.shape
    out_dim = A.shape[0]

    # ---- fold linear bias + BatchNorm (eval stats) into two rank-1 rows (f32)
    inv_std = jax.lax.rsqrt(running_var.astype(jnp.float32) + _BN_EPS)
    scale = gamma.astype(jnp.float32) * inv_std
    a_eff = A.reshape(out_dim).astype(jnp.float32) * scale
    b_eff = ((bias.astype(jnp.float32) - running_mean.astype(jnp.float32)) * scale
             + beta.astype(jnp.float32))

    # ---- pad to lane/sublane-friendly shapes ---------------------------------
    out_p = _round_up(out_dim, 128)
    params = jnp.zeros((2, out_p), jnp.float32)
    params = params.at[0, :out_dim].set(a_eff).at[1, :out_dim].set(b_eff)

    tb = _pick_batch_tile(batch, input_dim, out_p,
                          in_bytes=jnp.dtype(x.dtype).itemsize,
                          out_bytes=jnp.dtype(x.dtype).itemsize)
    batch_p = _round_up(batch, tb)
    if batch_p != batch:
        x = jnp.pad(x, ((0, batch_p - batch), (0, 0)))

    b_row = B.reshape(1, input_dim)

    out = pl.pallas_call(
        mlp_lora_kernel,
        out_shape=jax.ShapeDtypeStruct((batch_p, out_p), x.dtype),
        grid=(batch_p // tb,),
        in_specs=[
            pl.BlockSpec((tb, input_dim), lambda i: (i, 0)),   # pipelined x tiles
            pl.BlockSpec((1, input_dim), lambda i: (0, 0)),    # B row, pinned
            pl.BlockSpec((2, out_p), lambda i: (0, 0)),        # a_eff/b_eff, pinned
        ],
        out_specs=pl.BlockSpec((tb, out_p), lambda i: (i, 0)),
        compiler_params=pltpu.CompilerParams(
            dimension_semantics=("parallel",),
            vmem_limit_bytes=32 * 1024 * 1024,
        ),
    )(x, b_row, params)

    return {'attention': out[:batch, :out_dim]}


if __name__ == "__main__":
    # Small shapes consistent with the module (input_dim, out_dim scaled down).
    # Deliberately non-aligned batch/out_dim to exercise the padding paths.
    batch, input_dim, out_dim = 10, 256, 160

    key = jax.random.PRNGKey(0)
    kx, ka, kb, kbias = jax.random.split(key, 4)

    x = jax.random.normal(kx, (batch, input_dim), dtype=jnp.float32)

    # kaiming_normal_(nonlinearity='relu'): std = sqrt(2 / fan_in)
    A = jax.random.normal(ka, (out_dim, 1), dtype=jnp.float32) * jnp.sqrt(2.0 / 1.0)
    B = jax.random.normal(kb, (1, input_dim), dtype=jnp.float32) * jnp.sqrt(2.0 / input_dim)
    bias = jax.random.normal(kbias, (out_dim,), dtype=jnp.float32) * 0.01

    # BatchNorm1d default parameters / running stats.
    gamma = jnp.ones((out_dim,), dtype=jnp.float32)
    beta = jnp.zeros((out_dim,), dtype=jnp.float32)
    running_mean = jnp.zeros((out_dim,), dtype=jnp.float32)
    running_var = jnp.ones((out_dim,), dtype=jnp.float32)

    result = mlp_lora_forward(x, A, B, bias, gamma, beta,
                              running_mean, running_var)
    jax.block_until_ready(result['attention'])

    # Cross-check against pure-JAX reference (eval-mode BN, identity dropout).
    W = A @ B
    ref = x @ W.T + bias
    ref = (ref - running_mean) / jnp.sqrt(running_var + _BN_EPS) * gamma + beta
    ref = jnp.where(ref >= 0, ref, _LEAKY_SLOPE * ref)
    assert result['attention'].shape == (batch, out_dim)
    assert jnp.allclose(result['attention'], ref, atol=1e-4, rtol=1e-4)

    print("KERNEL_OK")
</pallas_src>

<mosaic_0001>
module attributes {stable_mosaic.version = 11 : i64} {
  func.func @mlp_lora_kernel(%arg0: i32, %arg1: memref<16x256xf32, #tpu.memory_space<vmem>>, %arg2: memref<1x256xf32, #tpu.memory_space<vmem>>, %arg3: memref<2x256xf32, #tpu.memory_space<vmem>>, %arg4: memref<16x256xf32, #tpu.memory_space<vmem>>) attributes {dimension_semantics = [#tpu.dimension_semantics<parallel>], iteration_bounds = array<i64: 1>, scalar_prefetch = 0 : i64, scratch_operands = 0 : i64, tpu.core_type = #tpu.core_type<tc>, window_params = [{transform_indices = @transform_0, window_bounds = array<i64: 16, 256>}, {pipeline_mode = #tpu.pipeline_mode<synchronous>, transform_indices = @transform_1, window_bounds = array<i64: 1, 256>}, {pipeline_mode = #tpu.pipeline_mode<synchronous>, transform_indices = @transform_2, window_bounds = array<i64: 2, 256>}, {transform_indices = @transform_3, window_bounds = array<i64: 16, 256>}]} {
    %c0 = arith.constant 0 : index
    %c0_0 = arith.constant 0 : index
    %0 = vector.load %arg1[%c0, %c0_0] : memref<16x256xf32, #tpu.memory_space<vmem>>, vector<16x256xf32>
    %c0_1 = arith.constant 0 : index
    %c0_2 = arith.constant 0 : index
    %1 = vector.load %arg2[%c0_1, %c0_2] : memref<1x256xf32, #tpu.memory_space<vmem>>, vector<1x256xf32>
    %2 = vector.broadcast %1 : vector<1x256xf32> to vector<16x256xf32>
    %3 = arith.mulf %0, %2 : vector<16x256xf32>
    %cst = arith.constant dense<0.000000e+00> : vector<16xf32>
    %4 = vector.multi_reduction <add>, %3, %cst [1] : vector<16x256xf32> to vector<16xf32>
    %5 = vector.shape_cast %4 : vector<16xf32> to vector<16x1xf32>
    %c0_3 = arith.constant 0 : index
    %c0_4 = arith.constant 0 : index
    %6 = vector.load %arg3[%c0_3, %c0_4] : memref<2x256xf32, #tpu.memory_space<vmem>>, vector<1x256xf32>
    %c1 = arith.constant 1 : index
    %c0_5 = arith.constant 0 : index
    %7 = vector.load %arg3[%c1, %c0_5] : memref<2x256xf32, #tpu.memory_space<vmem>>, vector<1x256xf32>
    %8 = vector.broadcast %5 : vector<16x1xf32> to vector<16x256xf32>
    %9 = vector.broadcast %6 : vector<1x256xf32> to vector<16x256xf32>
    %10 = arith.mulf %8, %9 : vector<16x256xf32>
    %11 = vector.broadcast %7 : vector<1x256xf32> to vector<16x256xf32>
    %12 = arith.addf %10, %11 : vector<16x256xf32>
    %cst_6 = arith.constant 2.000000e-01 : f32
    %13 = vector.broadcast %cst_6 : f32 to vector<16x256xf32>
    %14 = arith.mulf %13, %12 : vector<16x256xf32>
    %15 = arith.maximumf %12, %14 : vector<16x256xf32>
    %c0_7 = arith.constant 0 : index
    %c0_8 = arith.constant 0 : index
    %16 = vector.load %arg4[%c0_7, %c0_8] : memref<16x256xf32, #tpu.memory_space<vmem>>, vector<16x256xf32>
    tpu.vector_store %arg4[%c0_7, %c0_8], %15 {strides = array<i32>} : memref<16x256xf32, #tpu.memory_space<vmem>>, vector<16x256xf32>,
    return
  }
  func.func @transform_0(%arg0: i32) -> (i32, i32) {
    %c0_i32 = arith.constant 0 : i32
    %c0_i32_0 = arith.constant 0 : i32
    return %arg0, %c0_i32 : i32, i32
  }
  func.func @transform_1(%arg0: i32) -> (i32, i32) {
    %c0_i32 = arith.constant 0 : i32
    %c0_i32_0 = arith.constant 0 : i32
    %c0_i32_1 = arith.constant 0 : i32
    return %c0_i32, %c0_i32_0 : i32, i32
  }
  func.func @transform_2(%arg0: i32) -> (i32, i32) {
    %c0_i32 = arith.constant 0 : i32
    %c0_i32_0 = arith.constant 0 : i32
    %c0_i32_1 = arith.constant 0 : i32
    return %c0_i32, %c0_i32_0 : i32, i32
  }
  func.func @transform_3(%arg0: i32) -> (i32, i32) {
    %c0_i32 = arith.constant 0 : i32
    %c0_i32_0 = arith.constant 0 : i32
    return %arg0, %c0_i32 : i32, i32
  }
}

</mosaic_0001>

<bundles_post_ra>
// kernel: tpu_custom_call.1
= control target key start
LH: loop header
LB: loop body
LE: loop exit
PB: predicated region body
PF: predicated region fallthrough
CT: control target
= control target key end

     0   :  { %8 = vsyncpa [#allocation3], 0  ;;  %s283_s0 = inlined_call_operand.hbm [shape: f32[16,256], index: 0, kind: input, shape index: {}]   ;;  %s284_s1 = inlined_call_operand.hbm [shape: f32[1,256], index: 1, kind: input, shape index: {}]   ;;  %s285_s2 = inlined_call_operand.hbm [shape: f32[2,256], index: 2, kind: input, shape index: {}]   ;;  %s286_s3 = inlined_call_operand.hbm [shape: f32[16,256], index: 3, kind: output, shape index: {}]  }
   0x1   :  { %9 = vsyncpa [#allocation6], 0  ;;  %s29_s14 = sshll.u32 %s284_s1, 4  ;;  %s30_s14 = int_to_ptr.hbm [resolvable:$true] %s29_s14 }
   0x2   :  { %10 = vsyncpa [#allocation4], 0  ;;  %s239_s15 = smov [#allocation5]   ;;  %s15_s19 = sshll.u32 %s283_s0, 4  ;;  %s16_s19 = int_to_ptr.hbm [resolvable:$true] %s15_s19 }
   0x3   :  { %s31_s16 = sshll.u32 %s239_s15, 4  ;;  %s240_s20 = smov [#allocation2]   ;;  %s32_s16 = int_to_ptr.vmem [resolvable:$true] %s31_s16 }
   0x4   :  { %34 = dma.hbm_to_vmem [thread:$0]  %s30_s14, 32, %s32_s16, [#allocation6]  }
   0x5   :  { %s17_s21 = sshll.u32 %s240_s20, 4  ;;  %s241_s22 = smov 256   ;;  %s18_s21 = int_to_ptr.vmem [resolvable:$true] %s17_s21 }
   0x6   :  { %s242_s23 = smov 16   ;;  %s40_s25 = sshll.u32 %s285_s2, 4  ;;  %s41_s25 = int_to_ptr.hbm [resolvable:$true] %s40_s25 }
   0x7   :  { %23 = dma.hbm_to_vmem [thread:$0]  %s16_s19, 512, %s18_s21, [#allocation3], %s241_s22, %s241_s22, %s242_s23  }
   0x8   :  { %s243_s26 = smov [#allocation7]  }
   0x9   :  { %s42_s27 = sshll.u32 %s243_s26, 4  ;;  %s43_s27 = int_to_ptr.vmem [resolvable:$true] %s42_s27 }
   0xa   :  { %45 = dma.hbm_to_vmem [thread:$0]  %s41_s25, 64, %s43_s27, [#allocation6]  }
   0xb   :  { %233 = dma.done.wait [#allocation3], 512  }
   0xc   :  { %234 = vsyncadd [#allocation3], 4294966784 }
   0xd   :  { %235 = dma.done.wait [#allocation6], 96  }
   0xe   :  { %236 = vsyncadd [#allocation6], 4294967200  ;;  %v58_v0 = vld [vmem:[#allocation2] sm:$0xff]  ;;  %v59_v1 = vld [vmem:[#allocation2 + $0x8] sm:$0xff]  ;;  %s244_s0 = smov [#allocation8]   ;;  %s117_s30 = sshll.u32 %s286_s3, 4  ;;  %s118_s30 = int_to_ptr.hbm [resolvable:$true] %s117_s30 }
   0xf   :  { %v62_v2 = vld [vmem:[#allocation5] sm:$0x3]  ;;  %v60_v7 = vld [vmem:[#allocation2 + $0x10] sm:$0xff]  ;;  %v61_v8 = vld [vmem:[#allocation2 + $0x18] sm:$0xff]  ;;  %s115_s2 = sshll.u32 %s244_s0, 4  ;;  %s116_s2 = int_to_ptr.vmem [resolvable:$true] %s115_s2 }
  0x10   :  { %v64_v3 = vperm.slane %v62_v2, 0  ;;  %v65_v4 = vperm.slane %v62_v2, 1  ;;  %v78_v13 = vld [vmem:[#allocation7] ss:$2 sm:$0x3] }
  0x11   :  { %v80_v14 = vld [vmem:[#allocation7 + $0x1] ss:$2 sm:$0x3]  ;;  %v82_v15 = vperm.slane %v78_v13, 0  ;;  %v83_v16 = vperm.slane %v78_v13, 1 }
  0x12   :  { %v68_v5 = vmul.f32 %v64_v3, %v58_v0  ;;  %v69_v6 = vmul.f32 %v65_v4, %v59_v1  ;;  %v70_v10 = vmul.f32 %v64_v3, %v60_v7  ;;  %v71_v11 = vmul.f32 %v65_v4, %v61_v8 }
  0x13   :  { %v91_v17 = vperm.slane %v80_v14, 0  ;;  %v92_v18 = vperm.slane %v80_v14, 1 }
  0x14   :  { %v72_v9 = vadd.f32 %v69_v6, %v68_v5  ;;  %v75_v12 = vadd.f32 %v71_v11, %v70_v10 }
  0x16   :  { %73 = vadd.xlane.f32.xlu0 %v72_v9 }
  0x1e   :  { %76 = vadd.xlane.f32.xlu0 %v75_v12 }
  0x89   :  { %v74_v19 = vpop.xlane.xlu0 %73 }
  0x8a   :  { %v86_v20 = vmul.f32 %v82_v15, %v74_v19  ;;  %v87_v21 = vmul.f32 %v83_v16, %v74_v19 }
  0x8c   :  { %v95_v22 = vadd.f32 %v91_v17, %v86_v20  ;;  %v96_v23 = vadd.f32 %v92_v18, %v87_v21 }
  0x8e   :  { %v99_v24 = vmul.f32 0.2, %v95_v22  ;;  %v100_v25 = vmul.f32 0.2, %v96_v23 }
  0x90   :  { %v103_v26 = vmax.f32 %v95_v22, %v99_v24  ;;  %v104_v27 = vmax.f32 %v96_v23, %v100_v25 }
  0x91   :  { %v77_v28 = vpop.xlane.xlu0 %76 }
  0x92   :  { %107 = vst [vmem:[#allocation8] sm:$0xff] %v103_v26  ;;  %v88_v29 = vmul.f32 %v82_v15, %v77_v28  ;;  %v89_v30 = vmul.f32 %v83_v16, %v77_v28 }
  0x93   :  { %108 = vst [vmem:[#allocation8 + $0x8] sm:$0xff] %v104_v27 }
  0x94   :  { %v97_v31 = vadd.f32 %v91_v17, %v88_v29  ;;  %v98_v32 = vadd.f32 %v92_v18, %v89_v30 }
  0x96   :  { %v101_v33 = vmul.f32 0.2, %v97_v31  ;;  %v102_v34 = vmul.f32 0.2, %v98_v32 }
  0x98   :  { %v105_v35 = vmax.f32 %v97_v31, %v101_v33  ;;  %v106_v36 = vmax.f32 %v98_v32, %v102_v34 }
  0x9a   :  { %109 = vst [vmem:[#allocation8 + $0x10] sm:$0xff] %v105_v35 }
  0x9b   :  { %110 = vst [vmem:[#allocation8 + $0x18] sm:$0xff] %v106_v36 }
  0x9c   :  { %123 = dma.vmem_to_hbm [thread:$0]  %s116_s2, 512, %s118_s30, [#allocation4], %s241_s22, %s241_s22, %s242_s23  }
  0x9d   :  { %237 = dma.done.wait [#allocation4], 512  }
  0x9e   :  { %238 = vsyncadd [#allocation4], 4294966784 }
  0x9f   :  { %128 = vsyncpa [#allocation3], 1 }
  0xa0   :  { %129 = vsyncpa [#allocation6], 1 }
  0xa1   :  { %130 = vsyncpa [#allocation4], 1 }

</bundles_post_ra>
